<compile_context>
chip_gen: v6e
topology: v6e:2x2x1
jax: 0.10.0
libtpu: 0.0.40
codegen_flags: <defaults>
</compile_context>

<pallas_src>
import functools

import jax
import jax.numpy as jnp
from jax.experimental import pallas as pl
from jax.experimental.pallas import tpu as pltpu

EPSILON = 1e-4   # matches self.epsilon in the PyTorch module
OUT_PAD = 128    # VMEM-only lane padding of the final layer weights (not stored to HBM)


def _mlp_kernel(x_ref, w1_ref, b1_ref, w2_ref, b2_ref, w3_ref, b3_ref, out_ref, *, out_dim):
    """[Linear->ReLU]x2 -> Linear on one (TB, D) batch tile.

    Normalization is pre-folded into (w1, b1); Dropout is identity at inference.
    Matmul operands are bf16 (single-pass MXU), accumulation is f32.
    """
    x = x_ref[...].astype(jnp.bfloat16)

    h1 = jnp.dot(x, w1_ref[...], preferred_element_type=jnp.float32) + b1_ref[...]
    h1 = jnp.maximum(h1, 0.0).astype(jnp.bfloat16)

    h2 = jnp.dot(h1, w2_ref[...], preferred_element_type=jnp.float32) + b2_ref[...]
    h2 = jnp.maximum(h2, 0.0).astype(jnp.bfloat16)

    out = jnp.dot(h2, w3_ref[...], preferred_element_type=jnp.float32) + b3_ref[...]
    # Store only the real output columns; the masked store of a tiny-N block is
    # trivially hidden under the three matmuls and saves ~128x HBM write traffic.
    out_ref[...] = out[:, :out_dim].astype(out_ref.dtype)


def _round_up(n, m):
    return ((n + m - 1) // m) * m


def prepare_params(mean, std, w1, b1, w2, b2, w3, b3):
    """One-time parameter transform (done once at fit/load time, not per call).

    * Fold (x - mean) / (std + eps) into the first Linear layer.
    * Cast weights to bf16 (MXU operands); keep biases f32 (added post-accumulation).
    * Zero-pad the output layer to OUT_PAD (=128) columns for a lane-dense final matmul
      inside VMEM (the HBM output itself is stored unpadded).
    """
    inv_std = 1.0 / (std + EPSILON)                              # (1, D)
    w1f = (w1 * inv_std.reshape(-1, 1))                          # (D, H1)
    b1f = (b1 - (mean * inv_std) @ w1)                           # (1, H1)

    h2_dim, out_dim = w3.shape
    assert out_dim <= OUT_PAD, f"output_dim={out_dim} exceeds OUT_PAD={OUT_PAD}"
    w3p = jnp.zeros((h2_dim, OUT_PAD), jnp.float32).at[:, :out_dim].set(w3)
    b3p = jnp.zeros((1, OUT_PAD), jnp.float32).at[:, :out_dim].set(b3)

    return (w1f.astype(jnp.bfloat16), b1f.astype(jnp.float32),
            w2.astype(jnp.bfloat16), b2.astype(jnp.float32),
            w3p.astype(jnp.bfloat16), b3p.astype(jnp.float32), int(out_dim))


@functools.partial(jax.jit, static_argnames=("out_dim", "block_b"))
def regression_nn_forward(x, w1f, b1f, w2, b2, w3p, b3p, *, out_dim=1, block_b=4096):
    B, D = x.shape
    H1 = w1f.shape[1]
    H2 = w2.shape[1]

    # Batch tile: multiple of 8 sublanes, large enough to amortize the ~0.35us per-step
    # overhead, capped so that large batches produce >= 2 grid steps (v7x megacore).
    tb = min(block_b, _round_up(pl.cdiv(B, 2), 8))
    if tb >= B:
        tb = B  # single full-batch block (block dim == array dim is always legal)
    grid = (pl.cdiv(B, tb),)   # ragged last tile is masked by Pallas; no wrapper pad

    const = lambda i: (0, 0)   # weights/biases: same block every step -> resident, no re-DMA

    kernel = functools.partial(_mlp_kernel, out_dim=out_dim)

    out = pl.pallas_call(
        kernel,
        out_shape=jax.ShapeDtypeStruct((B, out_dim), jnp.float32),
        grid=grid,
        in_specs=[
            pl.BlockSpec((tb, D), lambda i: (i, 0)),     # x: streamed per batch tile (f32 in HBM)
            pl.BlockSpec((D, H1), const),                # w1 bf16 (normalization folded in)
            pl.BlockSpec((1, H1), const),                # b1 f32 (folded)
            pl.BlockSpec((H1, H2), const),               # w2 bf16
            pl.BlockSpec((1, H2), const),                # b2 f32
            pl.BlockSpec((H2, OUT_PAD), const),          # w3 bf16 (padded to 128 lanes in VMEM)
            pl.BlockSpec((1, OUT_PAD), const),           # b3 f32 (padded to 128 lanes in VMEM)
        ],
        out_specs=pl.BlockSpec((tb, out_dim), lambda i: (i, 0)),   # unpadded HBM output
        compiler_params=pltpu.CompilerParams(
            # TODO(synk): use pltpu.CORE_PARALLEL on v7x for explicit 2-TC sharding.
            dimension_semantics=(pltpu.PARALLEL,),
        ),
    )(x, w1f, b1f, w2, b2, w3p, b3p)

    return out


def kaiming_uniform(key, fan_in, fan_out):
    # nn.init.kaiming_uniform_ default: bound = sqrt(6 / fan_in).
    # PyTorch weight is (out, in); we store transposed (in, out) for x @ W.
    bound = jnp.sqrt(6.0 / fan_in)
    return jax.random.uniform(key, (fan_in, fan_out), jnp.float32, -bound, bound)


def reference_forward(x, mean, std, w1, b1, w2, b2, w3, b3):
    xn = (x - mean) / (std + EPSILON)
    h1 = jnp.maximum(xn @ w1 + b1, 0.0)
    h2 = jnp.maximum(h1 @ w2 + b2, 0.0)
    return h2 @ w3 + b3


if __name__ == "__main__":
    # Small shapes consistent with RegressionNN(input_dim=32, hidden_layers=[64, 32], output_dim=1)
    batch = 8
    input_dim = 32
    hidden_layers = [64, 32]
    output_dim = 1

    key = jax.random.PRNGKey(0)
    kx, km, ks, k1, k2, k3 = jax.random.split(key, 6)

    x = jax.random.normal(kx, (batch, input_dim), jnp.float32)

    # Per-feature normalization stats (as set by fit()); deterministic here.
    mean = jax.random.normal(km, (1, input_dim), jnp.float32) * 0.1
    std = jnp.abs(jax.random.normal(ks, (1, input_dim), jnp.float32)) + 0.5

    # Deterministic kaiming-uniform weights; biases filled with 0.01 (see _init_weights).
    w1 = kaiming_uniform(k1, input_dim, hidden_layers[0])
    b1 = jnp.full((1, hidden_layers[0]), 0.01, jnp.float32)
    w2 = kaiming_uniform(k2, hidden_layers[0], hidden_layers[1])
    b2 = jnp.full((1, hidden_layers[1]), 0.01, jnp.float32)
    w3 = kaiming_uniform(k3, hidden_layers[1], output_dim)
    b3 = jnp.full((1, output_dim), 0.01, jnp.float32)

    # One-time parameter transform: fold normalization, cast to bf16, pad w3/b3 for VMEM.
    w1f, b1f, w2f, b2f, w3p, b3p, out_dim = prepare_params(mean, std, w1, b1, w2, b2, w3, b3)

    out = regression_nn_forward(x, w1f, b1f, w2f, b2f, w3p, b3p,
                                out_dim=out_dim, block_b=4096)
    out = jax.block_until_ready(out)

    ref = reference_forward(x, mean, std, w1, b1, w2, b2, w3, b3)
    assert out.shape == (batch, output_dim)
    # bf16 MXU operands (f32 accumulation): compare against the f32 reference with a
    # tolerance appropriate for bf16 (~0.4% relative per operand).
    assert jnp.allclose(out, ref, atol=5e-2, rtol=5e-2), (
        f"max abs err {jnp.max(jnp.abs(out - ref))}")

    print("KERNEL_OK")
</pallas_src>

<mosaic_0001>
module attributes {stable_mosaic.version = 11 : i64} {
  func.func @_mlp_kernel(%arg0: i32, %arg1: memref<8x32xf32, #tpu.memory_space<vmem>>, %arg2: memref<32x64xbf16, #tpu.memory_space<vmem>>, %arg3: memref<1x64xf32, #tpu.memory_space<vmem>>, %arg4: memref<64x32xbf16, #tpu.memory_space<vmem>>, %arg5: memref<1x32xf32, #tpu.memory_space<vmem>>, %arg6: memref<32x128xbf16, #tpu.memory_space<vmem>>, %arg7: memref<1x128xf32, #tpu.memory_space<vmem>>, %arg8: memref<8x1xf32, #tpu.memory_space<vmem>>) attributes {dimension_semantics = [#tpu.dimension_semantics<parallel>], iteration_bounds = array<i64: 1>, scalar_prefetch = 0 : i64, scratch_operands = 0 : i64, tpu.core_type = #tpu.core_type<tc>, window_params = [{transform_indices = @transform_0, window_bounds = array<i64: 8, 32>}, {pipeline_mode = #tpu.pipeline_mode<synchronous>, transform_indices = @transform_1, window_bounds = array<i64: 32, 64>}, {pipeline_mode = #tpu.pipeline_mode<synchronous>, transform_indices = @transform_2, window_bounds = array<i64: 1, 64>}, {pipeline_mode = #tpu.pipeline_mode<synchronous>, transform_indices = @transform_3, window_bounds = array<i64: 64, 32>}, {pipeline_mode = #tpu.pipeline_mode<synchronous>, transform_indices = @transform_4, window_bounds = array<i64: 1, 32>}, {pipeline_mode = #tpu.pipeline_mode<synchronous>, transform_indices = @transform_5, window_bounds = array<i64: 32, 128>}, {pipeline_mode = #tpu.pipeline_mode<synchronous>, transform_indices = @transform_6, window_bounds = array<i64: 1, 128>}, {transform_indices = @transform_7, window_bounds = array<i64: 8, 1>}]} {
    %c0 = arith.constant 0 : index
    %c0_0 = arith.constant 0 : index
    %0 = vector.load %arg1[%c0, %c0_0] : memref<8x32xf32, #tpu.memory_space<vmem>>, vector<8x32xf32>
    %1 = arith.truncf %0 : vector<8x32xf32> to vector<8x32xbf16>
    %c0_1 = arith.constant 0 : index
    %c0_2 = arith.constant 0 : index
    %2 = vector.load %arg2[%c0_1, %c0_2] : memref<32x64xbf16, #tpu.memory_space<vmem>>, vector<32x64xbf16>
    %cst = arith.constant dense<0.000000e+00> : vector<8x64xf32>
    %3 = tpu.matmul %1, %2, %cst {dimension_numbers = #tpu.dot_dimension_numbers<[1], [0], [0], [1], [0, 0, 1, 1], [], []>} : vector<8x32xbf16>, vector<32x64xbf16>, vector<8x64xf32> -> vector<8x64xf32>
    %c0_3 = arith.constant 0 : index
    %c0_4 = arith.constant 0 : index
    %4 = vector.load %arg3[%c0_3, %c0_4] : memref<1x64xf32, #tpu.memory_space<vmem>>, vector<1x64xf32>
    %5 = vector.broadcast %4 : vector<1x64xf32> to vector<8x64xf32>
    %6 = arith.addf %3, %5 : vector<8x64xf32>
    %cst_5 = arith.constant 0.000000e+00 : f32
    %7 = vector.broadcast %cst_5 : f32 to vector<8x64xf32>
    %8 = arith.maximumf %6, %7 : vector<8x64xf32>
    %9 = arith.truncf %8 : vector<8x64xf32> to vector<8x64xbf16>
    %c0_6 = arith.constant 0 : index
    %c0_7 = arith.constant 0 : index
    %10 = vector.load %arg4[%c0_6, %c0_7] : memref<64x32xbf16, #tpu.memory_space<vmem>>, vector<64x32xbf16>
    %cst_8 = arith.constant dense<0.000000e+00> : vector<8x32xf32>
    %11 = tpu.matmul %9, %10, %cst_8 {dimension_numbers = #tpu.dot_dimension_numbers<[1], [0], [0], [1], [0, 0, 1, 1], [], []>} : vector<8x64xbf16>, vector<64x32xbf16>, vector<8x32xf32> -> vector<8x32xf32>
    %c0_9 = arith.constant 0 : index
    %c0_10 = arith.constant 0 : index
    %12 = vector.load %arg5[%c0_9, %c0_10] : memref<1x32xf32, #tpu.memory_space<vmem>>, vector<1x32xf32>
    %13 = vector.broadcast %12 : vector<1x32xf32> to vector<8x32xf32>
    %14 = arith.addf %11, %13 : vector<8x32xf32>
    %cst_11 = arith.constant 0.000000e+00 : f32
    %15 = vector.broadcast %cst_11 : f32 to vector<8x32xf32>
    %16 = arith.maximumf %14, %15 : vector<8x32xf32>
    %17 = arith.truncf %16 : vector<8x32xf32> to vector<8x32xbf16>
    %c0_12 = arith.constant 0 : index
    %c0_13 = arith.constant 0 : index
    %18 = vector.load %arg6[%c0_12, %c0_13] : memref<32x128xbf16, #tpu.memory_space<vmem>>, vector<32x128xbf16>
    %cst_14 = arith.constant dense<0.000000e+00> : vector<8x128xf32>
    %19 = tpu.matmul %17, %18, %cst_14 {dimension_numbers = #tpu.dot_dimension_numbers<[1], [0], [0], [1], [0, 0, 1, 1], [], []>} : vector<8x32xbf16>, vector<32x128xbf16>, vector<8x128xf32> -> vector<8x128xf32>
    %c0_15 = arith.constant 0 : index
    %c0_16 = arith.constant 0 : index
    %20 = vector.load %arg7[%c0_15, %c0_16] : memref<1x128xf32, #tpu.memory_space<vmem>>, vector<1x128xf32>
    %21 = vector.broadcast %20 : vector<1x128xf32> to vector<8x128xf32>
    %22 = arith.addf %19, %21 : vector<8x128xf32>
    %23 = vector.extract_strided_slice %22 {offsets = [0, 0], sizes = [8, 1], strides = [1, 1]} : vector<8x128xf32> to vector<8x1xf32>
    %c0_17 = arith.constant 0 : index
    %c0_18 = arith.constant 0 : index
    %24 = vector.load %arg8[%c0_17, %c0_18] : memref<8x1xf32, #tpu.memory_space<vmem>>, vector<8x1xf32>
    tpu.vector_store %arg8[%c0_17, %c0_18], %23 {strides = array<i32>} : memref<8x1xf32, #tpu.memory_space<vmem>>, vector<8x1xf32>,
    return
  }
  func.func @transform_0(%arg0: i32) -> (i32, i32) {
    %c0_i32 = arith.constant 0 : i32
    %c0_i32_0 = arith.constant 0 : i32
    return %arg0, %c0_i32 : i32, i32
  }
  func.func @transform_1(%arg0: i32) -> (i32, i32) {
    %c0_i32 = arith.constant 0 : i32
    %c0_i32_0 = arith.constant 0 : i32
    %c0_i32_1 = arith.constant 0 : i32
    return %c0_i32, %c0_i32_0 : i32, i32
  }
  func.func @transform_2(%arg0: i32) -> (i32, i32) {
    %c0_i32 = arith.constant 0 : i32
    %c0_i32_0 = arith.constant 0 : i32
    %c0_i32_1 = arith.constant 0 : i32
    return %c0_i32, %c0_i32_0 : i32, i32
  }
  func.func @transform_3(%arg0: i32) -> (i32, i32) {
    %c0_i32 = arith.constant 0 : i32
    %c0_i32_0 = arith.constant 0 : i32
    %c0_i32_1 = arith.constant 0 : i32
    return %c0_i32, %c0_i32_0 : i32, i32
  }
  func.func @transform_4(%arg0: i32) -> (i32, i32) {
    %c0_i32 = arith.constant 0 : i32
    %c0_i32_0 = arith.constant 0 : i32
    %c0_i32_1 = arith.constant 0 : i32
    return %c0_i32, %c0_i32_0 : i32, i32
  }
  func.func @transform_5(%arg0: i32) -> (i32, i32) {
    %c0_i32 = arith.constant 0 : i32
    %c0_i32_0 = arith.constant 0 : i32
    %c0_i32_1 = arith.constant 0 : i32
    return %c0_i32, %c0_i32_0 : i32, i32
  }
  func.func @transform_6(%arg0: i32) -> (i32, i32) {
    %c0_i32 = arith.constant 0 : i32
    %c0_i32_0 = arith.constant 0 : i32
    %c0_i32_1 = arith.constant 0 : i32
    return %c0_i32, %c0_i32_0 : i32, i32
  }
  func.func @transform_7(%arg0: i32) -> (i32, i32) {
    %c0_i32 = arith.constant 0 : i32
    %c0_i32_0 = arith.constant 0 : i32
    return %arg0, %c0_i32 : i32, i32
  }
}

</mosaic_0001>

<bundles_post_ra>
// kernel: regression_nn_forward.1
= control target key start
LH: loop header
LB: loop body
LE: loop exit
PB: predicated region body
PF: predicated region fallthrough
CT: control target
= control target key end

     0   :  { %v318_v0 = vmov 0.0   ;;  %vm319_vm0 = vmmov 0   ;;  %vm52_vm1 = vcmask 261120   ;;  %vm137_vm2 = vcmask 523264   ;;  %s404_s1 = inlined_call_operand.vmem [shape: bf16[32,64], index: 1, kind: input, shape index: {}]   ;;  %s405_s0 = inlined_call_operand.vmem [shape: f32[8,32], index: 0, kind: input, shape index: {}]   ;;  %s406_s3 = inlined_call_operand.vmem [shape: bf16[64,32], index: 3, kind: input, shape index: {}]   ;;  %s407_s5 = inlined_call_operand.vmem [shape: bf16[32,128], index: 5, kind: input, shape index: {}]   ;;  %s408_s2 = inlined_call_operand.vmem [shape: f32[1,64], index: 2, kind: input, shape index: {}]   ;;  %s409_s4 = inlined_call_operand.vmem [shape: f32[1,32], index: 4, kind: input, shape index: {}]   ;;  %s410_s6 = inlined_call_operand.vmem [shape: f32[1,128], index: 6, kind: input, shape index: {}]   ;;  %s411_s7 = inlined_call_operand.vmem [shape: f32[8,1], index: 7, kind: output, shape index: {}]  }
   0x1   :  { %280 = vmatprep.subr.bf16.mxu0 %v318_v0  ;;  %v310_v1 = vld [vmem:[%s404_s1 + $0x8] sm:$0xff]   ;;  %284 = vmatprep.mubr.msk.bf16.mxu0 %vm319_vm0, %v318_v0  ;;  %v311_v2 = vld [vmem:[%s404_s1] sm:$0xff]   ;;  %v312_v4 = vld [vmem:[%s406_s3 + $0x18] sm:$0xff]   ;;  %vm249_vm3 = vcmask 7168  }
   0x2   :  { %288 = vmatprep.subr.bf16.mxu1 %v318_v0  ;;  %296 = vmatprep.mubr.msk.bf16.mxu1 %vm319_vm0, %v318_v0  ;;  %v27_v3 = vld [vmem:[%s405_s0] sm:$0xff]  ;;  %v313_v5 = vld [vmem:[%s406_s3 + $0x10] sm:$0xff]   ;;  %v314_v7 = vld [vmem:[%s406_s3 + $0x8] sm:$0xff]  }
   0x3   :  { %281 = vmatpush3.bf16.msra.mxu0 %v310_v1  ;;  %v28_v6 = vpack.c.bf16 %v27_v3, %v27_v3  ;;  %289 = vmatpush3.bf16.msra.mxu1 %v312_v4  ;;  %v315_v8 = vld [vmem:[%s406_s3] sm:$0xff]   ;;  %v316_v9 = vld [vmem:[%s407_s5 + $0x8] sm:$0xff]  }
   0x4   :  { %282 = vmatprep.subr.bf16.mxu0 %v318_v0  ;;  %290 = vmatprep.subr.bf16.mxu1 %v318_v0  ;;  %v255_v10 = vld [vmem:[%s408_s2] ss:$0 sm:$0xff] }
   0x5   :  { %v317_v18 = vld [vmem:[%s407_s5] sm:$0xff]  }
   0x6   :  { %v259_v19 = vld [vmem:[%s409_s4] ss:$0 sm:$0xff] }
   0x7   :  { %283 = vmatpush3.bf16.msra.mxu0 %v311_v2  ;;  %291 = vmatpush3.bf16.msra.mxu1 %v313_v5  ;;  %v265_v27 = vld [vmem:[%s410_s6] ss:$0 sm:$0xff] }
   0x8   :  { %300 = vmatprep.subr.bf16.mxu0 %v318_v0  ;;  %292 = vmatprep.subr.bf16.mxu1 %v318_v0 }
   0xa   :  { %285 = vmatmul.mubr.msk.bf16.vlgmr.msra.gmra.mxu0 %vm52_vm1, %v28_v6 }
   0xb   :  { %304 = vmatprep.mubr.msk.bf16.mxu0 %vm319_vm0, %v318_v0  ;;  %293 = vmatpush3.bf16.msra.mxu1 %v314_v7 }
   0xc   :  { %294 = vmatprep.subr.bf16.mxu1 %v318_v0  ;;  %301 = vmatpush3.bf16.msra.mxu0 %v316_v9 }
   0xd   :  { %302 = vmatprep.subr.bf16.mxu0 %v318_v0 }
   0xf   :  { %295 = vmatpush3.bf16.msra.mxu1 %v315_v8 }
  0x10   :  { %303 = vmatpush3.bf16.msra.mxu0 %v317_v18 }
  0xca   :  { %v90_v11 = vpop.f32.mrf.mxu0 }
  0xcb   :  { %v91_v12 = vadd.f32 %v255_v10, %v90_v11 }
  0xcc   :  { %v286_v13 = vpop.f32.mrf.mxu0 }
  0xcd   :  { %v96_v14 = vmax.f32 %v91_v12, 0.0 }
  0xce   :  { %v93_v15 = vpop.f32.mrf.mxu0 }
  0xcf   :  { %v97_v16 = vpack.c.bf16 %v96_v14, %v96_v14 }
  0xd0   :  { %v287_v17 = vpop.f32.mrf.mxu0 }
  0xd1   :  { %297 = vmatmul.mubr.msk.bf16.vlgmr.msra.gmra.mxu1 %vm137_vm2, %v97_v16 }
 0x191   :  { %v175_v20 = vpop.f32.mrf.mxu1 }
 0x192   :  { %v176_v21 = vadd.f32 %v259_v19, %v175_v20 }
 0x193   :  { %v298_v22 = vpop.f32.mrf.mxu1 }
 0x194   :  { %v181_v23 = vmax.f32 %v176_v21, 0.0 }
 0x195   :  { %v178_v24 = vpop.f32.mrf.mxu1 }
 0x196   :  { %v182_v25 = vpack.c.bf16 %v181_v23, %v181_v23 }
 0x197   :  { %v299_v26 = vpop.f32.mrf.mxu1 }
 0x198   :  { %305 = vmatmul.mubr.msk.bf16.vlgmr.msra.gmra.mxu0 %vm52_vm1, %v182_v25 }
 0x258   :  { %v243_v28 = vpop.f32.mrf.mxu0 }
 0x259   :  { %v244_v29 = vadd.f32 %v265_v27, %v243_v28 }
 0x25a   :  { %v306_v30 = vpop.f32.mrf.mxu0 }
 0x25b   :  { %250 = vst.msk [vmem:[%s411_s7] sm:$0xff] %vm249_vm3, %v244_v29 }
 0x25c   :  { %v246_v31 = vpop.f32.mrf.mxu0 }
 0x25e   :  { %v307_v32 = vpop.f32.mrf.mxu0 }

</bundles_post_ra>
